<compile_context>
chip_gen: v7x
topology: tpu7x:2x2x1
jax: 0.10.0
libtpu: 0.0.40
codegen_flags: <defaults>
</compile_context>

<pallas_src>
import jax
import jax.numpy as jnp
from jax.experimental import pallas as pl
from jax.experimental.pallas import tpu as pltpu

OD_PAD = 128  # lane-dense padded output width (true output width is 10)


# ----------------------------- Pallas kernel ------------------------------- #

def mlp_kernel(x_ref, w1_ref, b1_ref, w2_ref, b2_ref, o_ref):
    # x_ref:  (tm, K)       bf16
    # w1_ref: (K, 128)      bf16     b1_ref: (1, 128)    f32
    # w2_ref: (128, OD_PAD) bf16     b2_ref: (1, OD_PAD) f32
    # o_ref:  (tm, OD_PAD)  f32
    h = jnp.dot(x_ref[...], w1_ref[...], preferred_element_type=jnp.float32)
    h = jnp.maximum(h + b1_ref[...], 0.0)
    o = jnp.dot(h.astype(jnp.bfloat16), w2_ref[...],
                preferred_element_type=jnp.float32) + b2_ref[...]
    o_ref[...] = o.astype(o_ref.dtype)


def mlp(x2d, w1, b1, w2, b2, *, tm=512):
    """Fused fc1->relu->fc2 over rows of x2d.  x2d/w1/w2 are bf16; out is f32."""
    M, K = x2d.shape
    Hd = w1.shape[1]
    Od = w2.shape[1]           # already padded to OD_PAD (lane dense)

    # Row tile: big enough to amortize per-grid-step overhead, small enough to
    # keep the (tm, 128) f32 intermediate from spilling.  For small inputs fall
    # back to one block rounded up to the bf16 sublane multiple (16).
    if M < tm:
        tm = max(16, ((M + 15) // 16) * 16)
    M_pad = pl.cdiv(M, tm) * tm
    if M_pad != M:
        x2d = jnp.pad(x2d, ((0, M_pad - M), (0, 0)))

    out = pl.pallas_call(
        mlp_kernel,
        out_shape=jax.ShapeDtypeStruct((M_pad, Od), jnp.float32),
        grid=(M_pad // tm,),
        in_specs=[
            pl.BlockSpec((tm, K), lambda i: (i, 0)),     # x tile, pipelined
            pl.BlockSpec((K, Hd), lambda i: (0, 0)),     # weights stay resident
            pl.BlockSpec((1, Hd), lambda i: (0, 0)),
            pl.BlockSpec((Hd, Od), lambda i: (0, 0)),
            pl.BlockSpec((1, Od), lambda i: (0, 0)),
        ],
        out_specs=pl.BlockSpec((tm, Od), lambda i: (i, 0)),
        compiler_params=pltpu.CompilerParams(
            dimension_semantics=("parallel",),
            vmem_limit_bytes=32 * 1024 * 1024,
        ),
    )(x2d, w1, b1, w2, b2)
    return out[:M]


# ------------------------- params + forward (glue) ------------------------- #

def init_params(key):
    ks = jax.random.split(key, 4)
    return {
        # fc1: Linear(288, 128), fc2: Linear(128, 10) -> stored as (in, out)
        "fc1_w": jax.random.normal(ks[0], (288, 128), jnp.float32) * 0.05,
        "fc1_b": jax.random.normal(ks[1], (1, 128), jnp.float32) * 0.05,
        "fc2_w": jax.random.normal(ks[2], (128, 10), jnp.float32) * 0.05,
        "fc2_b": jax.random.normal(ks[3], (1, 10), jnp.float32) * 0.05,
    }


def net4_forward(x, params):
    N, C, H, W = x.shape  # NCHW; W must equal 32*3*3 = 288 for fc(x) to be legal
    # NOTE: the conv1x1 -> relu -> maxpool branch of the PyTorch reference is
    # dead code (its result `res` is never used); it is intentionally omitted
    # so no HBM traffic / MXU work is spent on a discarded tensor.
    x2d = x.reshape(-1, W).astype(jnp.bfloat16)

    w1 = params["fc1_w"].astype(jnp.bfloat16)
    b1 = params["fc1_b"]
    od = params["fc2_w"].shape[1]
    w2 = jnp.pad(params["fc2_w"], ((0, 0), (0, OD_PAD - od))).astype(jnp.bfloat16)
    b2 = jnp.pad(params["fc2_b"], ((0, 0), (0, OD_PAD - od)))

    out2d = mlp(x2d, w1, b1, w2, b2)
    return out2d[:, :od].reshape(N, C, H, od)


if __name__ == "__main__":
    key = jax.random.PRNGKey(0)
    kx, kp = jax.random.split(key)
    # W must be 288 for self.fc(x) to be shape-legal, exactly as in PyTorch.
    x = jax.random.normal(kx, (2, 3, 4, 288), jnp.float32)
    params = init_params(kp)
    fwd = jax.jit(net4_forward)
    out = fwd(x, params)
    jax.block_until_ready(out)
    assert out.shape == (2, 3, 4, 10) and out.dtype == jnp.float32
    print("KERNEL_OK")
</pallas_src>

<mosaic_0001>
module attributes {stable_mosaic.version = 11 : i64} {
  func.func @mlp_kernel(%arg0: i32, %arg1: memref<32x288xbf16, #tpu.memory_space<vmem>>, %arg2: memref<288x128xbf16, #tpu.memory_space<vmem>>, %arg3: memref<1x128xf32, #tpu.memory_space<vmem>>, %arg4: memref<128x128xbf16, #tpu.memory_space<vmem>>, %arg5: memref<1x128xf32, #tpu.memory_space<vmem>>, %arg6: memref<32x128xf32, #tpu.memory_space<vmem>>) attributes {dimension_semantics = [#tpu.dimension_semantics<parallel>], iteration_bounds = array<i64: 1>, scalar_prefetch = 0 : i64, scratch_operands = 0 : i64, tpu.core_type = #tpu.core_type<tc>, window_params = [{transform_indices = @transform_0, window_bounds = array<i64: 32, 288>}, {pipeline_mode = #tpu.pipeline_mode<synchronous>, transform_indices = @transform_1, window_bounds = array<i64: 288, 128>}, {pipeline_mode = #tpu.pipeline_mode<synchronous>, transform_indices = @transform_2, window_bounds = array<i64: 1, 128>}, {pipeline_mode = #tpu.pipeline_mode<synchronous>, transform_indices = @transform_3, window_bounds = array<i64: 128, 128>}, {pipeline_mode = #tpu.pipeline_mode<synchronous>, transform_indices = @transform_4, window_bounds = array<i64: 1, 128>}, {transform_indices = @transform_5, window_bounds = array<i64: 32, 128>}]} {
    %c0 = arith.constant 0 : index
    %c0_0 = arith.constant 0 : index
    %0 = vector.load %arg1[%c0, %c0_0] : memref<32x288xbf16, #tpu.memory_space<vmem>>, vector<32x288xbf16>
    %c0_1 = arith.constant 0 : index
    %c0_2 = arith.constant 0 : index
    %1 = vector.load %arg2[%c0_1, %c0_2] : memref<288x128xbf16, #tpu.memory_space<vmem>>, vector<288x128xbf16>
    %cst = arith.constant dense<0.000000e+00> : vector<32x128xf32>
    %2 = tpu.matmul %0, %1, %cst {dimension_numbers = #tpu.dot_dimension_numbers<[1], [0], [0], [1], [0, 0, 1, 1], [], []>} : vector<32x288xbf16>, vector<288x128xbf16>, vector<32x128xf32> -> vector<32x128xf32>
    %c0_3 = arith.constant 0 : index
    %c0_4 = arith.constant 0 : index
    %3 = vector.load %arg3[%c0_3, %c0_4] : memref<1x128xf32, #tpu.memory_space<vmem>>, vector<1x128xf32>
    %4 = vector.broadcast %3 : vector<1x128xf32> to vector<32x128xf32>
    %5 = arith.addf %2, %4 : vector<32x128xf32>
    %cst_5 = arith.constant 0.000000e+00 : f32
    %6 = vector.broadcast %cst_5 : f32 to vector<32x128xf32>
    %7 = arith.maximumf %5, %6 : vector<32x128xf32>
    %8 = arith.truncf %7 : vector<32x128xf32> to vector<32x128xbf16>
    %c0_6 = arith.constant 0 : index
    %c0_7 = arith.constant 0 : index
    %9 = vector.load %arg4[%c0_6, %c0_7] : memref<128x128xbf16, #tpu.memory_space<vmem>>, vector<128x128xbf16>
    %cst_8 = arith.constant dense<0.000000e+00> : vector<32x128xf32>
    %10 = tpu.matmul %8, %9, %cst_8 {dimension_numbers = #tpu.dot_dimension_numbers<[1], [0], [0], [1], [0, 0, 1, 1], [], []>} : vector<32x128xbf16>, vector<128x128xbf16>, vector<32x128xf32> -> vector<32x128xf32>
    %c0_9 = arith.constant 0 : index
    %c0_10 = arith.constant 0 : index
    %11 = vector.load %arg5[%c0_9, %c0_10] : memref<1x128xf32, #tpu.memory_space<vmem>>, vector<1x128xf32>
    %12 = vector.broadcast %11 : vector<1x128xf32> to vector<32x128xf32>
    %13 = arith.addf %10, %12 : vector<32x128xf32>
    %c0_11 = arith.constant 0 : index
    %c0_12 = arith.constant 0 : index
    %14 = vector.load %arg6[%c0_11, %c0_12] : memref<32x128xf32, #tpu.memory_space<vmem>>, vector<32x128xf32>
    tpu.vector_store %arg6[%c0_11, %c0_12], %13 {strides = array<i32>} : memref<32x128xf32, #tpu.memory_space<vmem>>, vector<32x128xf32>,
    return
  }
  func.func @transform_0(%arg0: i32) -> (i32, i32) {
    %c0_i32 = arith.constant 0 : i32
    %c0_i32_0 = arith.constant 0 : i32
    return %arg0, %c0_i32 : i32, i32
  }
  func.func @transform_1(%arg0: i32) -> (i32, i32) {
    %c0_i32 = arith.constant 0 : i32
    %c0_i32_0 = arith.constant 0 : i32
    %c0_i32_1 = arith.constant 0 : i32
    return %c0_i32, %c0_i32_0 : i32, i32
  }
  func.func @transform_2(%arg0: i32) -> (i32, i32) {
    %c0_i32 = arith.constant 0 : i32
    %c0_i32_0 = arith.constant 0 : i32
    %c0_i32_1 = arith.constant 0 : i32
    return %c0_i32, %c0_i32_0 : i32, i32
  }
  func.func @transform_3(%arg0: i32) -> (i32, i32) {
    %c0_i32 = arith.constant 0 : i32
    %c0_i32_0 = arith.constant 0 : i32
    %c0_i32_1 = arith.constant 0 : i32
    return %c0_i32, %c0_i32_0 : i32, i32
  }
  func.func @transform_4(%arg0: i32) -> (i32, i32) {
    %c0_i32 = arith.constant 0 : i32
    %c0_i32_0 = arith.constant 0 : i32
    %c0_i32_1 = arith.constant 0 : i32
    return %c0_i32, %c0_i32_0 : i32, i32
  }
  func.func @transform_5(%arg0: i32) -> (i32, i32) {
    %c0_i32 = arith.constant 0 : i32
    %c0_i32_0 = arith.constant 0 : i32
    return %arg0, %c0_i32 : i32, i32
  }
}

</mosaic_0001>

<bundles_post_ra>
// kernel: net4_forward.1
= control target key start
LH: loop header
LB: loop body
LE: loop exit
PB: predicated region body
PF: predicated region fallthrough
CT: control target
= control target key end

     0   :  { %vm210_vm0 = vcmask 261120   ;;  %s735_s1 = inlined_call_operand.vmem [shape: bf16[288,128], index: 1, kind: input, shape index: {}]   ;;  %s736_s0 = inlined_call_operand.vmem [shape: bf16[32,288], index: 0, kind: input, shape index: {}]   ;;  %s737_s3 = inlined_call_operand.vmem [shape: bf16[128,128], index: 3, kind: input, shape index: {}]   ;;  %s738_s2 = inlined_call_operand.vmem [shape: f32[1,128], index: 2, kind: input, shape index: {}]   ;;  %s739_s4 = inlined_call_operand.vmem [shape: f32[1,128], index: 4, kind: input, shape index: {}]   ;;  %s740_s5 = inlined_call_operand.vmem [shape: f32[32,128], index: 5, kind: output, shape index: {}]  }
   0x1   :  { %v555_v0 = vld [vmem:[%s735_s1 + $0x40] sm:$0xff]   ;;  %v557_v2 = vld [vmem:[%s735_s1 + $0x48] sm:$0xff]   ;;  %v559_v4 = vld [vmem:[%s735_s1 + $0x50] sm:$0xff]  }
   0x2   :  { %v556_v1 = vld [vmem:[%s735_s1] sm:$0xff]   ;;  %485 = vmatprep.subr.bf16.mxu0 %v555_v0  ;;  %v558_v3 = vld [vmem:[%s735_s1 + $0x8] sm:$0xff]   ;;  %v560_v5 = vld [vmem:[%s735_s1 + $0x10] sm:$0xff]  }
   0x3   :  { %486 = vmatpush3.bf16.msra.mxu0 %v556_v1  ;;  %v561_v6 = vld [vmem:[%s735_s1 + $0x58] sm:$0xff]   ;;  %v563_v8 = vld [vmem:[%s735_s1 + $0x60] sm:$0xff]   ;;  %v565_v11 = vld [vmem:[%s735_s1 + $0x68] sm:$0xff]  }
   0x4   :  { %487 = vmatprep.subr.bf16.mxu0 %v557_v2  ;;  %v562_v7 = vld [vmem:[%s735_s1 + $0x18] sm:$0xff]   ;;  %v564_v9 = vld [vmem:[%s735_s1 + $0x20] sm:$0xff]   ;;  %v566_v12 = vld [vmem:[%s735_s1 + $0x28] sm:$0xff]  }
   0x5   :  { %v570_v10 = vld [vmem:[%s735_s1 + $0x80] sm:$0xff]   ;;  %v567_v13 = vld [vmem:[%s735_s1 + $0x70] sm:$0xff]   ;;  %v575_v15 = vld [vmem:[%s735_s1 + $0x88] sm:$0xff]  }
   0x6   :  { %527 = vmatprep.subr.bf16.mxu1 %v570_v10  ;;  %v574_v14 = vld [vmem:[%s736_s0 + $0x4] ss:$12 sps:$4 sm:$0xff]   ;;  %v576_v16 = vld [vmem:[%s736_s0 + $0x8] ss:$12 sps:$4 sm:$0xff]   ;;  %v577_v17 = vld [vmem:[%s736_s0 + $0x20] ss:$12 sps:$4 sm:$0xff]  }
   0x7   :  { %488 = vmatpush3.bf16.msra.mxu0 %v558_v3  ;;  %528 = vmatpush3.bf16.msra.mxu1 %v570_v10  ;;  %v568_v18 = vld [vmem:[%s735_s1 + $0x30] sm:$0xff]   ;;  %v569_v19 = vld [vmem:[%s735_s1 + $0x78] sm:$0xff]   ;;  %v581_v20 = vld [vmem:[%s737_s3] sm:$0xff]  }
   0x8   :  { %489 = vmatprep.subr.bf16.mxu0 %v559_v4  ;;  %249 = vmatprep.mubr.bf16.mxu0 %v574_v14  ;;  %v582_v21 = vld [vmem:[%s737_s3 + $0x8] sm:$0xff]   ;;  %v571_v22 = vld [vmem:[%s735_s1 + $0x38] sm:$0xff]   ;;  %v583_v23 = vld [vmem:[%s737_s3 + $0x10] sm:$0xff]  }
   0x9   :  { %529 = vmatprep.subr.bf16.mxu1 %v575_v15  ;;  %531 = vmatprep.mubr.msk.bf16.mxu1 %vm210_vm0, %v576_v16  ;;  %v572_v24 = vld [vmem:[%s736_s0] ss:$12 sps:$4 sm:$0xff]   ;;  %v578_v25 = vld [vmem:[%s736_s0 + $0x1c] ss:$12 sps:$4 sm:$0xff]   ;;  %v580_v26 = vld [vmem:[%s736_s0 + $0x18] ss:$12 sps:$4 sm:$0xff]  }
   0xa   :  { %v584_v27 = vld [vmem:[%s737_s3 + $0x18] sm:$0xff]   ;;  %v585_v28 = vld [vmem:[%s737_s3 + $0x20] sm:$0xff]   ;;  %v586_v29 = vld [vmem:[%s737_s3 + $0x28] sm:$0xff]  }
   0xb   :  { %490 = vmatpush3.bf16.msra.mxu0 %v560_v5  ;;  %530 = vmatpush3.bf16.msra.mxu1 %v575_v15  ;;  %v587_v30 = vld [vmem:[%s737_s3 + $0x30] sm:$0xff]   ;;  %v588_v31 = vld [vmem:[%s737_s3 + $0x38] sm:$0xff]   ;;  %v449_v38 = vld [vmem:[%s738_s2] ss:$0 sm:$0xff] }
   0xc   :  { %491 = vmatprep.subr.bf16.mxu0 %v561_v6  ;;  %535 = vmatprep.subr.bf16.mxu1 %v581_v20  ;;  %v476_v63 = vld [vmem:[%s739_s4] ss:$0 sm:$0xff] }
   0xe   :  { %532 = vmatmul.mubr.msk.bf16.vlgmr.msra.gmra.mrb[0].mxu1 %vm210_vm0, %v577_v17 }
   0xf   :  { %492 = vmatpush3.bf16.msra.mxu0 %v562_v7  ;;  %536 = vmatpush3.bf16.msra.mxu1 %v581_v20 }
  0x10   :  { %493 = vmatprep.subr.bf16.mxu0 %v563_v8  ;;  %537 = vmatprep.subr.bf16.mxu1 %v582_v21 }
  0x13   :  { %494 = vmatpush3.bf16.msra.mxu0 %v564_v9  ;;  %538 = vmatpush3.bf16.msra.mxu1 %v582_v21 }
  0x14   :  { %495 = vmatprep.subr.bf16.mxu0 %v565_v11  ;;  %539 = vmatprep.subr.bf16.mxu1 %v583_v23 }
  0x17   :  { %496 = vmatpush3.bf16.msra.mxu0 %v566_v12  ;;  %540 = vmatpush3.bf16.msra.mxu1 %v583_v23 }
  0x18   :  { %497 = vmatprep.subr.bf16.mxu0 %v567_v13  ;;  %541 = vmatprep.subr.bf16.mxu1 %v584_v27 }
  0x1b   :  { %498 = vmatpush3.bf16.msra.mxu0 %v568_v18  ;;  %542 = vmatpush3.bf16.msra.mxu1 %v584_v27 }
  0x1c   :  { %499 = vmatprep.subr.bf16.mxu0 %v569_v19  ;;  %543 = vmatprep.subr.bf16.mxu1 %v585_v28 }
  0x1f   :  { %500 = vmatpush3.bf16.msra.mxu0 %v571_v22  ;;  %544 = vmatpush3.bf16.msra.mxu1 %v585_v28 }
  0x20   :  { %545 = vmatprep.subr.bf16.mxu1 %v586_v29 }
  0x22   :  { %250 = vmatmul.mubr.bf16.vlgmr.msra.gmra.mrb[0].mxu0 %v572_v24 }
  0x23   :  { %257 = vmatprep.mubr.bf16.mxu0 %v578_v25  ;;  %546 = vmatpush3.bf16.msra.mxu1 %v586_v29 }
  0x24   :  { %547 = vmatprep.subr.bf16.mxu1 %v587_v30 }
  0x27   :  { %548 = vmatpush3.bf16.msra.mxu1 %v587_v30 }
  0x28   :  { %549 = vmatprep.subr.bf16.mxu1 %v588_v31 }
  0x2a   :  { %258 = vmatmul.mubr.bf16.gmra.mrb[4].mxu0 %v580_v26 }
  0x2b   :  { %550 = vmatpush3.bf16.msra.mxu1 %v588_v31 }
  0xe1   :  { %v533_v32 = vpop.f32.mrb[0].mxu1 }
  0xe2   :  { %v300_v33 = vpop.f32.mrb[1].mxu1 }
  0xe3   :  { %v534_v34 = vpop.f32.mrb[2].mxu1 }
  0xe4   :  { %v303_v35 = vpop.f32.mrb[3].mxu1 }
  0xf5   :  { %v501_v36 = vpop.f32.mrb[0].mxu0 }
  0xf6   :  { %v502_v37 = vpop.f32.mrb[1].mxu0 }
  0xf7   :  { %v503_v39 = vadd.f32 %v502_v37, %v501_v36  ;;  %v504_v40 = vpop.f32.mrb[2].mxu0 }
  0xf8   :  { %v505_v41 = vpop.f32.mrb[3].mxu0 }
  0xf9   :  { %v506_v42 = vadd.f32 %v505_v41, %v504_v40  ;;  %v252_v43 = vadd.f32 %v503_v39, %v449_v38 }
  0xfb   :  { %v301_v44 = vadd.f32 %v300_v33, %v252_v43  ;;  %v255_v45 = vadd.f32 %v506_v42, %v449_v38 }
  0xfd   :  { %v304_v46 = vadd.f32 %v303_v35, %v255_v45  ;;  %v507_v47 = vpop.f32.mrb[4].mxu0  ;;  %v315_v49 = vmax.f32 %v301_v44, 0.0 }
  0xfe   :  { %v508_v48 = vpop.f32.mrb[5].mxu0 }
  0xff   :  { %v316_v50 = vmax.f32 %v304_v46, 0.0  ;;  %v509_v51 = vadd.f32 %v508_v48, %v507_v47  ;;  %v510_v52 = vpop.f32.mrb[6].mxu0 }
 0x100   :  { %v511_v53 = vpop.f32.mrb[7].mxu0 }
 0x101   :  { %v319_v54 = vpack.c.bf16 %v316_v50, %v315_v49  ;;  %v260_v55 = vadd.f32 %v509_v51, %v449_v38  ;;  %v512_v56 = vadd.f32 %v511_v53, %v510_v52 }
 0x103   :  { %v309_v57 = vadd.f32 %v533_v32, %v260_v55  ;;  %v263_v58 = vadd.f32 %v512_v56, %v449_v38  ;;  %551 = vmatprep.mubr.bf16.mxu1 %v319_v54 }
 0x105   :  { %v312_v59 = vadd.f32 %v534_v34, %v263_v58  ;;  %v317_v60 = vmax.f32 %v309_v57, 0.0 }
 0x107   :  { %v318_v61 = vmax.f32 %v312_v59, 0.0 }
 0x109   :  { %v320_v62 = vpack.c.bf16 %v318_v61, %v317_v60 }
 0x10b   :  { %552 = vmatmul.mubr.bf16.vlgmr.msra.gmra.mrb[4].mxu1 %v320_v62 }
 0x1de   :  { %v553_v0 = vpop.f32.mrb[4].mxu1 }
 0x1df   :  { %v435_v1 = vadd.f32 %v553_v0, %v476_v63  ;;  %v426_v2 = vpop.f32.mrb[5].mxu1 }
 0x1e0   :  { %v427_v3 = vadd.f32 %v476_v63, %v426_v2  ;;  %v554_v4 = vpop.f32.mrb[6].mxu1 }
 0x1e1   :  { %443 = vst [vmem:[%s740_s5 + $0x10] sm:$0xff] %v435_v1  ;;  %v438_v5 = vadd.f32 %v554_v4, %v476_v63  ;;  %v429_v6 = vpop.f32.mrb[7].mxu1 }
 0x1e2   :  { %441 = vst [vmem:[%s740_s5] sm:$0xff] %v427_v3  ;;  %v430_v7 = vadd.f32 %v476_v63, %v429_v6 }
 0x1e3   :  { %444 = vst [vmem:[%s740_s5 + $0x18] sm:$0xff] %v438_v5 }
 0x1e4   :  { %442 = vst [vmem:[%s740_s5 + $0x8] sm:$0xff] %v430_v7 }

</bundles_post_ra>
